<compile_context>
chip_gen: v6e
topology: v6e:2x2x1
jax: 0.10.0
libtpu: 0.0.40
codegen_flags: <defaults>
</compile_context>

<pallas_src>
import functools
import math

import jax
import jax.numpy as jnp
from jax.experimental import pallas as pl
from jax.experimental.pallas import tpu as pltpu


def _cdiv(a, b):
    return -(-a // b)


def _round_up(v, m):
    return _cdiv(v, m) * m


_VMEM_BUDGET = 48 * 1024 * 1024  # conservative: fits v7x's 64 MiB physical VMEM


def _vmem_estimate(tm, Fp, x_in_bytes, x_out_bytes):
    """Worst-case VMEM footprint (double-buffered inputs/outputs)."""
    weight = 2 * Fp * Fp * 2                 # resident fc weight (bf16)
    x_in = 2 * tm * Fp * x_in_bytes          # activation tiles
    x_out = 2 * tm * Fp * x_out_bytes        # relu(fc) tiles
    p_out = 2 * tm * 128 * 4                 # (tm, 1) prob tile, lane-padded
    misc = 4 * Fp * 4 + (1 << 20)            # biases, cls row, headroom
    return weight + x_in + x_out + p_out + misc


def _pick_tm(M, Fp, x_in_bytes, x_out_bytes):
    """Rows per M block: multiple of 16, >=2 blocks when possible (megacore),
    shrunk until the VMEM estimate fits the budget."""
    mp16 = _round_up(M, 16)
    if mp16 <= 16:
        return mp16
    n_blocks = max(2, _cdiv(mp16, 512))      # cap ~512 rows per block
    tm = _round_up(_cdiv(mp16, n_blocks), 16)
    while tm > 16 and _vmem_estimate(tm, Fp, x_in_bytes, x_out_bytes) > _VMEM_BUDGET:
        tm = _round_up(_cdiv(tm, 2), 16)
    return tm


def _fused_fc_cls_kernel(x_ref, wfc_ref, bfc_ref, wcls_ref, bcls_ref,
                         x_out_ref, p_out_ref):
    """x_out = relu(x @ Wfc + bfc); p_out = sigmoid(x_out @ wcls + bcls).

    Grid: (i over M tiles,) -- "parallel".  The fc weight / biases / classifier
    row have constant block indices, so they are DMA'd from HBM exactly once
    and stay resident in VMEM for the whole grid.
    """
    x = x_ref[...].astype(jnp.bfloat16)                       # (tm, Fp)
    # MXU GEMM with f32 accumulation, then bias + ReLU epilogue in f32.
    y = jnp.dot(x, wfc_ref[...], preferred_element_type=jnp.float32)
    y = jnp.maximum(y + bfc_ref[...], 0.0)                    # (tm, Fp) f32
    x_out_ref[...] = y.astype(x_out_ref.dtype)                # bf16 writeback

    # Classifier head off the MXU: VPU multiply + XLU lane reduction.
    logits = jnp.sum(y * wcls_ref[...], axis=-1, keepdims=True) + bcls_ref[...]
    prob = pl.reciprocal(1.0 + jnp.exp(-logits), approx=True)  # EUP sigmoid
    p_out_ref[...] = prob.astype(p_out_ref.dtype)


def fused_fc_classifier(x2d, wfc, bfc, wcls, bcls, *, x_out_dtype=jnp.bfloat16):
    """x2d: (M, F_in) f32.  wfc: (Fp, Fp) bf16 (zero-padded rows/cols >= F_in),
    bfc: (1, Fp) f32, wcls: (1, Fp) f32, bcls: (1, 1) f32.
    Returns (x_out (Mp, Fp) x_out_dtype, p_out (Mp, 1) f32); slice outside."""
    M, F_in = x2d.shape
    Fp = wfc.shape[0]

    # K alignment: in the aligned case (F_in % 128 == 0, e.g. 2048) stream f32
    # activations straight from HBM and cast in-kernel (no extra HBM pass).
    # Otherwise do a single fused pad+cast so the in-kernel contraction dim is
    # exactly Fp with true zeros (no garbage-dependent padding).
    if F_in == Fp:
        x_in = x2d
    else:
        x_in = jnp.pad(x2d.astype(jnp.bfloat16), ((0, 0), (0, Fp - F_in)))

    x_in_bytes = jnp.dtype(x_in.dtype).itemsize
    x_out_bytes = jnp.dtype(x_out_dtype).itemsize

    tm = _pick_tm(M, Fp, x_in_bytes, x_out_bytes)
    grid_m = _cdiv(M, tm)
    Mp = grid_m * tm

    vmem_limit = int(min(128 << 20,
                         max(16 << 20,
                             _vmem_estimate(tm, Fp, x_in_bytes, x_out_bytes) * 5 // 4)))

    x_out, p_out = pl.pallas_call(
        _fused_fc_cls_kernel,
        out_shape=(
            jax.ShapeDtypeStruct((Mp, Fp), x_out_dtype),
            jax.ShapeDtypeStruct((Mp, 1), jnp.float32),
        ),
        grid_spec=pltpu.PrefetchScalarGridSpec(
            num_scalar_prefetch=0,
            grid=(grid_m,),
            in_specs=[
                pl.BlockSpec((tm, Fp), lambda i: (i, 0)),   # activations (per M tile)
                pl.BlockSpec((Fp, Fp), lambda i: (0, 0)),   # fc weight: resident, one fetch
                pl.BlockSpec((1, Fp), lambda i: (0, 0)),    # fc bias
                pl.BlockSpec((1, Fp), lambda i: (0, 0)),    # classifier weight row
                pl.BlockSpec((1, 1), lambda i: (0, 0)),     # classifier bias
            ],
            out_specs=[
                pl.BlockSpec((tm, Fp), lambda i: (i, 0)),   # x = relu(fc) (bf16)
                pl.BlockSpec((tm, 1), lambda i: (i, 0)),    # sigmoid(classifier)
            ],
        ),
        compiler_params=pltpu.CompilerParams(
            dimension_semantics=("parallel",),
            vmem_limit_bytes=vmem_limit,
        ),
    )(x_in, wfc, bfc, wcls, bcls)
    return x_out, p_out


def init_model_single_params(key, n_feature, dtype=jnp.float32):
    """Matches weights_init: xavier_uniform_ weights, zero biases (PyTorch layout)."""
    k1, k2 = jax.random.split(key)
    bound_fc = math.sqrt(6.0 / (n_feature + n_feature))
    bound_cls = math.sqrt(6.0 / (n_feature + 1))
    return {
        "w_fc": jax.random.uniform(k1, (n_feature, n_feature), dtype, -bound_fc, bound_fc),
        "b_fc": jnp.zeros((n_feature,), dtype),
        "w_cls": jax.random.uniform(k2, (1, n_feature), dtype, -bound_cls, bound_cls),
        "b_cls": jnp.zeros((1,), dtype),
    }


def pack_params(params):
    """One-time pack: transpose to (in, out), pad to lane multiples, cast.
    Invariant: wfc rows/cols >= n_feature are exactly zero, so padded K/N
    regions are inert in the kernel."""
    w_fc, b_fc = params["w_fc"], params["b_fc"]
    w_cls, b_cls = params["w_cls"], params["b_cls"]
    f_dim = w_fc.shape[0]
    fp = _round_up(f_dim, 128)
    wfc = jnp.zeros((fp, fp), jnp.bfloat16).at[:f_dim, :f_dim].set(
        w_fc.T.astype(jnp.bfloat16))
    bfc = jnp.zeros((1, fp), jnp.float32).at[0, :f_dim].set(b_fc.astype(jnp.float32))
    wcls = jnp.zeros((1, fp), jnp.float32).at[0, :f_dim].set(w_cls[0].astype(jnp.float32))
    bcls = b_cls.reshape(1, 1).astype(jnp.float32)
    return {"wfc": wfc, "bfc": bfc, "wcls": wcls, "bcls": bcls}


@functools.partial(jax.jit, static_argnames=("is_training",))
def model_single_forward(inputs, packed, is_training=False):
    """inputs: (..., n_feature) f32 -> (x, prob), matching Model_single.forward.
    x is returned in bf16 (kernel writeback dtype); prob in f32."""
    # TODO(synk): training-mode dropout(p=0.7) (pltpu.prng_seed/prng_random_bits)
    # is omitted; this is the deterministic (eval-mode) forward.
    del is_training
    orig_shape = inputs.shape
    f_dim = orig_shape[-1]
    m = math.prod(orig_shape[:-1]) if len(orig_shape) > 1 else 1
    x2d = inputs.reshape(m, f_dim).astype(jnp.float32)

    x_out, p_out = fused_fc_classifier(
        x2d, packed["wfc"], packed["bfc"], packed["wcls"], packed["bcls"],
        x_out_dtype=jnp.bfloat16)

    x = x_out[:m, :f_dim].reshape(orig_shape)
    prob = p_out[:m, :].reshape(orig_shape[:-1] + (1,))
    return x, prob


def model_single_reference(inputs, params):
    """Pure-jnp reference with the same bf16 operand rounding as the kernel GEMM."""
    orig_shape = inputs.shape
    f_dim = orig_shape[-1]
    x2d = inputs.reshape(-1, f_dim)
    xb = x2d.astype(jnp.bfloat16).astype(jnp.float32)
    wb = params["w_fc"].T.astype(jnp.bfloat16).astype(jnp.float32)
    h = jnp.maximum(xb @ wb + params["b_fc"][None, :].astype(jnp.float32), 0.0)
    logits = h @ params["w_cls"].T.astype(jnp.float32) + params["b_cls"][None, :]
    prob = jax.nn.sigmoid(logits)
    return h.reshape(orig_shape), prob.reshape(orig_shape[:-1] + (1,))


if __name__ == "__main__":
    # Small demo shapes; n_feature deliberately not a multiple of 128 to
    # exercise the lane-padding branch (the realistic n_feature=2048 takes the
    # zero-extra-pass aligned branch).
    B, T, n_feature = 2, 8, 200

    key = jax.random.PRNGKey(0)
    kx, kp = jax.random.split(key)
    inputs = jax.random.normal(kx, (B, T, n_feature), jnp.float32)
    params = init_model_single_params(kp, n_feature)
    packed = pack_params(params)      # one-time weight packing (outside the jitted forward)

    x, prob = model_single_forward(inputs, packed)
    x, prob = jax.block_until_ready((x, prob))

    x_ref, p_ref = model_single_reference(inputs, params)

    assert x.shape == (B, T, n_feature), x.shape
    assert prob.shape == (B, T, 1), prob.shape
    x_f32 = x.astype(jnp.float32)
    assert jnp.allclose(x_f32, x_ref, atol=2e-2, rtol=2e-2), \
        float(jnp.max(jnp.abs(x_f32 - x_ref)))
    assert jnp.allclose(prob, p_ref, atol=2e-2, rtol=2e-2), \
        float(jnp.max(jnp.abs(prob - p_ref)))
    print("KERNEL_OK")
</pallas_src>

<mosaic_0001>
module attributes {stable_mosaic.version = 11 : i64} {
  func.func @_fused_fc_cls_kernel(%arg0: i32, %arg1: memref<16x256xbf16, #tpu.memory_space<vmem>>, %arg2: memref<256x256xbf16, #tpu.memory_space<vmem>>, %arg3: memref<1x256xf32, #tpu.memory_space<vmem>>, %arg4: memref<1x256xf32, #tpu.memory_space<vmem>>, %arg5: memref<1x1xf32, #tpu.memory_space<vmem>>, %arg6: memref<16x256xbf16, #tpu.memory_space<vmem>>, %arg7: memref<16x1xf32, #tpu.memory_space<vmem>>) attributes {dimension_semantics = [#tpu.dimension_semantics<parallel>], iteration_bounds = array<i64: 1>, scalar_prefetch = 0 : i64, scratch_operands = 0 : i64, tpu.core_type = #tpu.core_type<tc>, window_params = [{transform_indices = @transform_0, window_bounds = array<i64: 16, 256>}, {pipeline_mode = #tpu.pipeline_mode<synchronous>, transform_indices = @transform_1, window_bounds = array<i64: 256, 256>}, {pipeline_mode = #tpu.pipeline_mode<synchronous>, transform_indices = @transform_2, window_bounds = array<i64: 1, 256>}, {pipeline_mode = #tpu.pipeline_mode<synchronous>, transform_indices = @transform_3, window_bounds = array<i64: 1, 256>}, {pipeline_mode = #tpu.pipeline_mode<synchronous>, transform_indices = @transform_4, window_bounds = array<i64: 1, 1>}, {transform_indices = @transform_5, window_bounds = array<i64: 16, 256>}, {transform_indices = @transform_6, window_bounds = array<i64: 16, 1>}]} {
    %c0 = arith.constant 0 : index
    %c0_0 = arith.constant 0 : index
    %0 = vector.load %arg1[%c0, %c0_0] : memref<16x256xbf16, #tpu.memory_space<vmem>>, vector<16x256xbf16>
    %c0_1 = arith.constant 0 : index
    %c0_2 = arith.constant 0 : index
    %1 = vector.load %arg2[%c0_1, %c0_2] : memref<256x256xbf16, #tpu.memory_space<vmem>>, vector<256x256xbf16>
    %cst = arith.constant dense<0.000000e+00> : vector<16x256xf32>
    %2 = tpu.matmul %0, %1, %cst {dimension_numbers = #tpu.dot_dimension_numbers<[1], [0], [0], [1], [0, 0, 1, 1], [], []>} : vector<16x256xbf16>, vector<256x256xbf16>, vector<16x256xf32> -> vector<16x256xf32>
    %c0_3 = arith.constant 0 : index
    %c0_4 = arith.constant 0 : index
    %3 = vector.load %arg3[%c0_3, %c0_4] : memref<1x256xf32, #tpu.memory_space<vmem>>, vector<1x256xf32>
    %4 = vector.broadcast %3 : vector<1x256xf32> to vector<16x256xf32>
    %5 = arith.addf %2, %4 : vector<16x256xf32>
    %cst_5 = arith.constant 0.000000e+00 : f32
    %6 = vector.broadcast %cst_5 : f32 to vector<16x256xf32>
    %7 = arith.maximumf %5, %6 : vector<16x256xf32>
    %8 = arith.truncf %7 : vector<16x256xf32> to vector<16x256xbf16>
    %c0_6 = arith.constant 0 : index
    %c0_7 = arith.constant 0 : index
    %9 = vector.load %arg6[%c0_6, %c0_7] : memref<16x256xbf16, #tpu.memory_space<vmem>>, vector<16x256xbf16>
    tpu.vector_store %arg6[%c0_6, %c0_7], %8 {strides = array<i32>} : memref<16x256xbf16, #tpu.memory_space<vmem>>, vector<16x256xbf16>,
    %c0_8 = arith.constant 0 : index
    %c0_9 = arith.constant 0 : index
    %10 = vector.load %arg4[%c0_8, %c0_9] : memref<1x256xf32, #tpu.memory_space<vmem>>, vector<1x256xf32>
    %11 = vector.broadcast %10 : vector<1x256xf32> to vector<16x256xf32>
    %12 = arith.mulf %7, %11 : vector<16x256xf32>
    %cst_10 = arith.constant dense<0.000000e+00> : vector<16xf32>
    %13 = vector.multi_reduction <add>, %12, %cst_10 [1] : vector<16x256xf32> to vector<16xf32>
    %14 = vector.shape_cast %13 : vector<16xf32> to vector<16x1xf32>
    %c0_11 = arith.constant 0 : index
    %c0_12 = arith.constant 0 : index
    %15 = vector.load %arg5[%c0_11, %c0_12] : memref<1x1xf32, #tpu.memory_space<vmem>>, vector<1x1xf32>
    %16 = vector.broadcast %15 : vector<1x1xf32> to vector<16x1xf32>
    %17 = arith.addf %14, %16 : vector<16x1xf32>
    %cst_13 = arith.constant 0.000000e+00 : f32
    %18 = vector.broadcast %cst_13 : f32 to vector<16x1xf32>
    %19 = arith.subf %18, %17 : vector<16x1xf32>
    %20 = math.exp %19 : vector<16x1xf32>
    %cst_14 = arith.constant 1.000000e+00 : f32
    %21 = vector.broadcast %cst_14 : f32 to vector<16x1xf32>
    %22 = arith.addf %21, %20 : vector<16x1xf32>
    %23 = tpu.reciprocal %22 {approx = true} : vector<16x1xf32> -> vector<16x1xf32>
    %c0_15 = arith.constant 0 : index
    %c0_16 = arith.constant 0 : index
    %24 = vector.load %arg7[%c0_15, %c0_16] : memref<16x1xf32, #tpu.memory_space<vmem>>, vector<16x1xf32>
    tpu.vector_store %arg7[%c0_15, %c0_16], %23 {strides = array<i32>} : memref<16x1xf32, #tpu.memory_space<vmem>>, vector<16x1xf32>,
    return
  }
  func.func @transform_0(%arg0: i32) -> (i32, i32) {
    %c0_i32 = arith.constant 0 : i32
    %c0_i32_0 = arith.constant 0 : i32
    return %arg0, %c0_i32 : i32, i32
  }
  func.func @transform_1(%arg0: i32) -> (i32, i32) {
    %c0_i32 = arith.constant 0 : i32
    %c0_i32_0 = arith.constant 0 : i32
    %c0_i32_1 = arith.constant 0 : i32
    return %c0_i32, %c0_i32_0 : i32, i32
  }
  func.func @transform_2(%arg0: i32) -> (i32, i32) {
    %c0_i32 = arith.constant 0 : i32
    %c0_i32_0 = arith.constant 0 : i32
    %c0_i32_1 = arith.constant 0 : i32
    return %c0_i32, %c0_i32_0 : i32, i32
  }
  func.func @transform_3(%arg0: i32) -> (i32, i32) {
    %c0_i32 = arith.constant 0 : i32
    %c0_i32_0 = arith.constant 0 : i32
    %c0_i32_1 = arith.constant 0 : i32
    return %c0_i32, %c0_i32_0 : i32, i32
  }
  func.func @transform_4(%arg0: i32) -> (i32, i32) {
    %c0_i32 = arith.constant 0 : i32
    %c0_i32_0 = arith.constant 0 : i32
    %c0_i32_1 = arith.constant 0 : i32
    return %c0_i32, %c0_i32_0 : i32, i32
  }
  func.func @transform_5(%arg0: i32) -> (i32, i32) {
    %c0_i32 = arith.constant 0 : i32
    %c0_i32_0 = arith.constant 0 : i32
    return %arg0, %c0_i32 : i32, i32
  }
  func.func @transform_6(%arg0: i32) -> (i32, i32) {
    %c0_i32 = arith.constant 0 : i32
    %c0_i32_0 = arith.constant 0 : i32
    return %arg0, %c0_i32 : i32, i32
  }
}

</mosaic_0001>

<bundles_post_ra>
// kernel: model_single_forward.1
= control target key start
LH: loop header
LB: loop body
LE: loop exit
PB: predicated region body
PF: predicated region fallthrough
CT: control target
= control target key end

     0   :  { %s559_s0 = inlined_call_operand.vmem [shape: bf16[16,256], index: 0, kind: input, shape index: {}]   ;;  %s560_s1 = inlined_call_operand.hbm [shape: bf16[256,256], index: 1, kind: input, shape index: {}]   ;;  %s561_s2 = inlined_call_operand.vmem [shape: f32[1,256], index: 2, kind: input, shape index: {}]   ;;  %s562_s3 = inlined_call_operand.vmem [shape: f32[1,256], index: 3, kind: input, shape index: {}]   ;;  %s563_s4 = inlined_call_operand.<no memory space> [shape: f32[1,1], index: 4, kind: input, shape index: {}]   ;;  %s564_s5 = inlined_call_operand.vmem [shape: bf16[16,256], index: 5, kind: output, shape index: {0}]   ;;  %s565_s6 = inlined_call_operand.vmem [shape: f32[16,1], index: 6, kind: output, shape index: {1}]  }
   0x1   :  { %v12_v0 = vstv %s563_s4 }
   0x2   :  { %13 = vst [vmem:[#allocation2] sm:$0x1] %v12_v0 }
   0x3   :  { %14 = vsyncpa [#allocation4], 0  ;;  %s491_s23 = smov [#allocation3]  }
   0x4   :  { %s22_s24 = sshll.u32 %s491_s23, 4  ;;  %s23_s24 = int_to_ptr.vmem [resolvable:$true] %s22_s24 }
   0x5   :  { %s477_s25 = scalar_lea.vmem %s23_s24, 4096  ;;  %p482_p1 = scmp.lt.s32.totalorder %s23_s24, %s23_s24 }
   0x6   :  { %p478_p0 = scmp.ne.s32.totalorder %s23_s24, %s477_s25  ;;  %p483_p2 = scmp.lt.s32.totalorder %s477_s25, %s477_s25 }
   0x8   :  { %p484_p3 = por %p483_p2, %p482_p1 }
   0xa   :  { %p485_p4 = pnand %p484_p3, %p478_p0 }
   0xc   :  { %488 = shalt.err (!%p485_p4)
}
   0xd   :  { %s492_s26 = smov 128   ;;  %s493_s27 = smov 8  }
   0xe   :  { %28 = dma.hbm_to_vmem [thread:$0]  %s560_s1, 4096, %s23_s24, [#allocation4], %s492_s26, %s492_s26, %s493_s27  }
   0xf   :  { %489 = dma.done.wait [#allocation4], 4096  }
  0x10   :  { %490 = vsyncadd [#allocation4], 4294963200  ;;  %v410_v1 = vld [vmem:[#allocation3 + $0x74] ss:$8 sps:$4 sm:$0xff]   ;;  %v412_v2 = vld [vmem:[#allocation3 + $0x70] ss:$8 sps:$4 sm:$0xff]   ;;  %v74_v35 = vlaneseq }
  0x11   :  { %254 = vmatprep.subr.bf16.mxu0 %v410_v1  ;;  %v413_v3 = vld [vmem:[#allocation3 + $0x64] ss:$8 sps:$4 sm:$0xff]   ;;  %v415_v4 = vld [vmem:[#allocation3 + $0x60] ss:$8 sps:$4 sm:$0xff]   ;;  %v416_v5 = vld [vmem:[#allocation3 + $0x54] ss:$8 sps:$4 sm:$0xff]  }
  0x12   :  { %255 = vmatpush1.bf16.msra.mxu0 %v412_v2  ;;  %v418_v6 = vld [vmem:[#allocation3 + $0x50] ss:$8 sps:$4 sm:$0xff]   ;;  %v419_v7 = vld [vmem:[#allocation3 + $0x44] ss:$8 sps:$4 sm:$0xff]   ;;  %v421_v8 = vld [vmem:[#allocation3 + $0x40] ss:$8 sps:$4 sm:$0xff]  }
  0x13   :  { %256 = vmatprep.subr.bf16.mxu0 %v413_v3  ;;  %v422_v9 = vld [vmem:[#allocation3 + $0x34] ss:$8 sps:$4 sm:$0xff]   ;;  %v424_v10 = vld [vmem:[#allocation3 + $0x30] ss:$8 sps:$4 sm:$0xff]   ;;  %v425_v11 = vld [vmem:[#allocation3 + $0x24] ss:$8 sps:$4 sm:$0xff]  }
  0x14   :  { %v427_v12 = vld [vmem:[#allocation3 + $0x20] ss:$8 sps:$4 sm:$0xff]   ;;  %v428_v13 = vld [vmem:[#allocation3 + $0x14] ss:$8 sps:$4 sm:$0xff]   ;;  %v430_v15 = vld [vmem:[#allocation3 + $0x10] ss:$8 sps:$4 sm:$0xff]  }
  0x15   :  { %v460_v14 = vld [vmem:[%s559_s0 + $0x4] ss:$8 sps:$4 sm:$0xff]   ;;  %v434_v18 = vld [vmem:[#allocation3 + $0xf4] ss:$8 sps:$4 sm:$0xff]   ;;  %v436_v19 = vld [vmem:[#allocation3 + $0xf0] ss:$8 sps:$4 sm:$0xff]  }
  0x16   :  { %257 = vmatpush1.bf16.msra.mxu0 %v415_v4  ;;  %v431_v16 = vld [vmem:[#allocation3 + $0x4] ss:$8 sps:$4 sm:$0xff]   ;;  %286 = vmatprep.mubr.bf16.mxu0 %v460_v14  ;;  %v433_v17 = vld [vmem:[#allocation3] ss:$8 sps:$4 sm:$0xff]   ;;  %v440_v22 = vld [vmem:[#allocation3 + $0xd4] ss:$8 sps:$4 sm:$0xff]  }
  0x17   :  { %258 = vmatprep.subr.bf16.mxu0 %v416_v5  ;;  %v437_v20 = vld [vmem:[#allocation3 + $0xe4] ss:$8 sps:$4 sm:$0xff]   ;;  %v439_v21 = vld [vmem:[#allocation3 + $0xe0] ss:$8 sps:$4 sm:$0xff]   ;;  %v442_v23 = vld [vmem:[#allocation3 + $0xd0] ss:$8 sps:$4 sm:$0xff]  }
  0x18   :  { %v443_v24 = vld [vmem:[#allocation3 + $0xc4] ss:$8 sps:$4 sm:$0xff]   ;;  %v445_v25 = vld [vmem:[#allocation3 + $0xc0] ss:$8 sps:$4 sm:$0xff]   ;;  %v446_v26 = vld [vmem:[#allocation3 + $0xb4] ss:$8 sps:$4 sm:$0xff]  }
  0x19   :  { %v448_v27 = vld [vmem:[#allocation3 + $0xb0] ss:$8 sps:$4 sm:$0xff]   ;;  %v449_v28 = vld [vmem:[#allocation3 + $0xa4] ss:$8 sps:$4 sm:$0xff]   ;;  %v451_v29 = vld [vmem:[#allocation3 + $0xa0] ss:$8 sps:$4 sm:$0xff]  }
  0x1a   :  { %259 = vmatpush1.bf16.msra.mxu0 %v418_v6  ;;  %v452_v30 = vld [vmem:[#allocation3 + $0x94] ss:$8 sps:$4 sm:$0xff]   ;;  %v454_v31 = vld [vmem:[#allocation3 + $0x90] ss:$8 sps:$4 sm:$0xff]   ;;  %v455_v32 = vld [vmem:[#allocation3 + $0x84] ss:$8 sps:$4 sm:$0xff]  }
  0x1b   :  { %260 = vmatprep.subr.bf16.mxu0 %v419_v7  ;;  %v457_v33 = vld [vmem:[#allocation3 + $0x80] ss:$8 sps:$4 sm:$0xff]   ;;  %v75_v36 = vshrl.u32 %v74_v35, 7  ;;  %v404_v1 = vld [vmem:[#allocation2] ss:$0 sm:$0xff]  ;;  %vm356_vm0 = vcmask 7168  }
  0x1c   :  { %v458_v34 = vld [vmem:[%s559_s0] ss:$8 sps:$4 sm:$0xff]  }
  0x1d   :  { %v76_v37 = vsub.s32 0, %v75_v36  ;;  %v72_v38 = vld [vmem:[%s561_s2] sm:$0x3]  ;;  %v80_v39 = vsub.s32 1, %v75_v36 }
  0x1e   :  { %261 = vmatpush1.bf16.msra.mxu0 %v421_v8  ;;  %v315_v42 = vld [vmem:[%s562_s3] sm:$0x3] }
  0x1f   :  { %262 = vmatprep.subr.bf16.mxu0 %v422_v9  ;;  %v77_v40 = vrot.slane %v72_v38, %v76_v37  ;;  %v81_v41 = vrot.slane %v72_v38, %v80_v39  ;;  %v320_v46 = vrot.slane %v315_v42, %v76_v37  ;;  %v324_v49 = vrot.slane %v315_v42, %v80_v39 }
  0x22   :  { %263 = vmatpush1.bf16.msra.mxu0 %v424_v10 }
  0x23   :  { %264 = vmatprep.subr.bf16.mxu0 %v425_v11 }
  0x26   :  { %265 = vmatpush1.bf16.msra.mxu0 %v427_v12 }
  0x27   :  { %266 = vmatprep.subr.bf16.mxu0 %v428_v13 }
  0x2a   :  { %267 = vmatpush1.bf16.msra.mxu0 %v430_v15 }
  0x2b   :  { %268 = vmatprep.subr.bf16.mxu0 %v431_v16 }
  0x2e   :  { %269 = vmatpush1.bf16.msra.mxu0 %v433_v17 }
  0x2f   :  { %270 = vmatprep.subr.bf16.mxu0 %v434_v18 }
  0x32   :  { %271 = vmatpush2.bf16.msra.mxu0 %v436_v19 }
  0x33   :  { %272 = vmatprep.subr.bf16.mxu0 %v437_v20 }
  0x36   :  { %273 = vmatpush2.bf16.msra.mxu0 %v439_v21 }
  0x37   :  { %274 = vmatprep.subr.bf16.mxu0 %v440_v22 }
  0x3a   :  { %275 = vmatpush2.bf16.msra.mxu0 %v442_v23 }
  0x3b   :  { %276 = vmatprep.subr.bf16.mxu0 %v443_v24 }
  0x3e   :  { %277 = vmatpush2.bf16.msra.mxu0 %v445_v25 }
  0x3f   :  { %278 = vmatprep.subr.bf16.mxu0 %v446_v26 }
  0x42   :  { %279 = vmatpush2.bf16.msra.mxu0 %v448_v27 }
  0x43   :  { %280 = vmatprep.subr.bf16.mxu0 %v449_v28 }
  0x46   :  { %281 = vmatpush2.bf16.msra.mxu0 %v451_v29 }
  0x47   :  { %282 = vmatprep.subr.bf16.mxu0 %v452_v30 }
  0x4a   :  { %283 = vmatpush2.bf16.msra.mxu0 %v454_v31 }
  0x4b   :  { %284 = vmatprep.subr.bf16.mxu0 %v455_v32 }
  0x4e   :  { %285 = vmatpush2.bf16.msra.mxu0 %v457_v33 }
  0x51   :  { %287 = vmatmul.mubr.bf16.vlgmr.msra.gmra.mxu0 %v458_v34 }
 0x111   :  { %v288_v43 = vpop.f32.mrf.mxu0 }
 0x112   :  { %v289_v44 = vadd.f32 %v288_v43, %v77_v40 }
 0x113   :  { %v290_v45 = vpop.f32.mrf.mxu0 }
 0x114   :  { %v297_v47 = vmax.f32 %v289_v44, 0.0  ;;  %v291_v48 = vadd.f32 %v290_v45, %v81_v41 }
 0x115   :  { %v292_v50 = vpop.f32.mrf.mxu0 }
 0x116   :  { %v298_v51 = vmax.f32 %v291_v48, 0.0  ;;  %v293_v52 = vadd.f32 %v292_v50, %v77_v40  ;;  %v327_v54 = vmul.f32 %v320_v46, %v297_v47 }
 0x117   :  { %v294_v53 = vpop.f32.mrf.mxu0 }
 0x118   :  { %v405_v55 = vpack.c.bf16 %v298_v51, %v297_v47  ;;  %v299_v56 = vmax.f32 %v293_v52, 0.0  ;;  %v295_v57 = vadd.f32 %v294_v53, %v81_v41  ;;  %v328_v58 = vmul.f32 %v324_v49, %v298_v51 }
 0x11a   :  { %313 = vst [vmem:[%s564_s5] sm:$0xff] %v405_v55  ;;  %v300_v59 = vmax.f32 %v295_v57, 0.0  ;;  %v331_v60 = vadd.f32 %v328_v58, %v327_v54  ;;  %v329_v61 = vmul.f32 %v320_v46, %v299_v56 }
 0x11c   :  { %v406_v62 = vpack.c.bf16 %v300_v59, %v299_v56  ;;  %v330_v63 = vmul.f32 %v324_v49, %v300_v59  ;;  %332 = vadd.xlane.f32.xlu0 %v331_v60 }
 0x11e   :  { %314 = vst [vmem:[%s564_s5 + $0x8] sm:$0xff] %v406_v62  ;;  %v334_v0 = vadd.f32 %v330_v63, %v329_v61 }
 0x120   :  { %335 = vadd.xlane.f32.xlu0 %v334_v0 }
 0x1a5   :  { %v333_v2 = vpop.xlane.xlu0 %332 }
 0x1a6   :  { %v344_v3 = vadd.f32 %v404_v1, %v333_v2 }
 0x1a8   :  { %v346_v4 = vsub.f32 0.0, %v344_v3 }
 0x1a9   :  { %v336_v5 = vpop.xlane.xlu0 %335 }
 0x1aa   :  { %v348_v6 = vmul.f32 1.442695, %v346_v4  ;;  %v345_v7 = vadd.f32 %v404_v1, %v336_v5 }
 0x1ac   :  { %461 = vpow2.f32 %v348_v6  ;;  %v347_v8 = vsub.f32 0.0, %v345_v7 }
 0x1ae   :  { %v350_v9 = vmul.f32 1.442695, %v347_v8 }
 0x1b0   :  { %463 = vpow2.f32 %v350_v9 }
 0x1b9   :  { %v462_v10 = vpop.eup %461 }
 0x1ba   :  { %v352_v11 = vadd.f32 1.0, %v462_v10 }
 0x1bc   :  { %465 = vrcp.f32 %v352_v11 }
 0x1bd   :  { %v464_v12 = vpop.eup %463 }
 0x1be   :  { %v353_v13 = vadd.f32 1.0, %v464_v12 }
 0x1c0   :  { %467 = vrcp.f32 %v353_v13 }
 0x1c9   :  { %v466_v14 = vpop.eup %465 }
 0x1ca   :  { %357 = vst.msk [vmem:[%s565_s6] sm:$0xff] %vm356_vm0, %v466_v14 }
 0x1cd   :  { %v468_v15 = vpop.eup %467 }
 0x1ce   :  { %358 = vst.msk [vmem:[%s565_s6 + $0x8] sm:$0xff] %vm356_vm0, %v468_v15 }
 0x1cf   :  { %367 = vsyncpa [#allocation4], 1 }

</bundles_post_ra>
